<compile_context>
chip_gen: v6e
topology: v6e:2x2x1
jax: 0.10.0
libtpu: 0.0.40
codegen_flags: <defaults>
</compile_context>

<pallas_src>
import functools

import jax
import jax.numpy as jnp
from jax.experimental import pallas as pl
from jax.experimental.pallas import tpu as pltpu


def _cdiv(a, b):
    return -(-a // b)


def _round_down_128(v):
    return max(128, (v // 128) * 128)


def _vmem_limits():
    """(vmem_limit_bytes, tile_budget_bytes), derived from the running chip."""
    phys = 64 << 20  # conservative fallback = v7x per-core VMEM
    try:
        info = pltpu.get_tpu_info()
        phys = int(getattr(info, "vmem_capacity_bytes", phys)) or phys
    except Exception:
        pass
    limit = min((phys * 25) // 32, 100 << 20)   # ~78% of physical, capped at 100 MiB
    budget = (limit * 3) // 4                   # headroom for Mosaic scratch / semaphores
    return limit, budget


def _pick_tiles(N, C, L, itemsize, budget_bytes):
    """Choose (l_tile, c_out_tile).

    The lane (L) tile is as wide as the VMEM budget allows (multiple of 128),
    shrunk only to keep >= ~4 total grid steps. c_out is tiled only when the
    resident weight tile would eat most of the budget (very large C)."""
    # --- c_out tile (usually the full C) ---
    tc = C
    if C % 8 == 0:
        while (tc > 8 and tc % 2 == 0 and (tc // 2) % 8 == 0
               and tc * C * itemsize > budget_bytes // 2):
            tc //= 2
    num_co = C // tc

    # --- L (lane) tile ---
    w_resident = (tc * C + tc) * itemsize
    if num_co > 1:
        w_resident *= 2                      # weight tile changes along co -> double-buffered
    per_lane = 2 * (C + tc) * itemsize       # double-buffered x block + out block, per lane
    avail = max(per_lane * 128, budget_bytes - w_resident)
    tl_cap = _round_down_128(avail // per_lane)

    if L <= 128:
        # Single full-extent lane block (always a legal block shape).
        # TODO(synk): per review item 9 a 128-wide masked edge block could be
        # used even here; full-extent is kept for tiny L to stay conservative.
        tl = L
    else:
        tl = min(tl_cap, _round_down_128(L))
        # Keep >= ~4 total grid steps (v7x megacore + pipeline depth), but never
        # go below a lane-dense 128-wide tile.
        min_steps = 4
        if N * num_co * _cdiv(L, tl) < min_steps:
            want_num_l = _cdiv(min_steps, N * num_co)
            tl = min(tl, _round_down_128(L // max(1, want_num_l)))
    return tl, tc


def _attention_block_kernel(x_ref, w_ref, b_ref, o_ref):
    # x_ref: (1, C, TL)   full channel extent (contraction axis), L on lanes
    # w_ref: (TC, C)      Conv1d weight tile [c_out, c_in] (kernel dim squeezed)
    # b_ref: (TC, 1)      f32 bias tile, broadcast over lanes
    # o_ref: (1, TC, TL)
    x = x_ref[0]                                                   # (C, TL)
    logits = jnp.dot(w_ref[...], x,
                     preferred_element_type=jnp.float32) + b_ref[...]
    att = jax.nn.sigmoid(logits)                                   # f32 epilogue
    tc = o_ref.shape[1]
    if tc == x_ref.shape[1]:
        x_rows = x                                                 # common path: c_out not tiled
    else:
        # Large-C path: gate rows for this c_out tile (tc is a multiple of 8).
        start = pl.multiple_of(pl.program_id(2) * tc, 8)
        x_rows = x_ref[0, pl.ds(start, tc), :]
    o_ref[0] = (x_rows * att).astype(o_ref.dtype)


@functools.partial(jax.jit, static_argnames=("single_buffer_params",))
def _attention_block_impl(x_ncl, weight, bias, single_buffer_params=True):
    N, C, L = x_ncl.shape
    itemsize = jnp.dtype(x_ncl.dtype).itemsize
    vmem_limit, budget = _vmem_limits()
    tl, tc = _pick_tiles(N, C, L, itemsize, budget)
    num_l = _cdiv(L, tl)
    num_co = C // tc

    weight = weight.astype(x_ncl.dtype)              # native-dtype MXU operands
    b2d = bias.reshape(C, 1).astype(jnp.float32)     # f32 bias for the epilogue

    # Grid-invariant weight/bias blocks: single-buffer them (saves a full VMEM
    # copy). Keep default double-buffering when c_out is tiled, since the
    # weight block then changes on every innermost grid step.
    if single_buffer_params and num_co == 1:
        w_spec = pl.BlockSpec((tc, C), lambda n, l, co: (co, 0),
                              pipeline_mode=pl.Buffered(1))
        b_spec = pl.BlockSpec((tc, 1), lambda n, l, co: (co, 0),
                              pipeline_mode=pl.Buffered(1))
    else:
        w_spec = pl.BlockSpec((tc, C), lambda n, l, co: (co, 0))
        b_spec = pl.BlockSpec((tc, 1), lambda n, l, co: (co, 0))

    return pl.pallas_call(
        _attention_block_kernel,
        out_shape=jax.ShapeDtypeStruct((N, C, L), x_ncl.dtype),
        grid_spec=pltpu.PrefetchScalarGridSpec(
            num_scalar_prefetch=0,
            # co innermost so the (co-invariant) x block stays resident.
            grid=(N, num_l, num_co),
            in_specs=[
                pl.BlockSpec((1, C, tl), lambda n, l, co: (n, 0, l)),
                w_spec,
                b_spec,
            ],
            out_specs=pl.BlockSpec((1, tc, tl), lambda n, l, co: (n, co, l)),
        ),
        compiler_params=pltpu.CompilerParams(
            dimension_semantics=("parallel", "parallel", "arbitrary"),
            vmem_limit_bytes=vmem_limit),
    )(x_ncl, weight, b2d)


def attention_block(x_ncl, weight, bias):
    """x_ncl: (N, C, L); weight: (C, C) = Conv1d(C, C, 1) weight with the size-1
    kernel dim squeezed; bias: (C,). Returns x * sigmoid(conv1x1(x))."""
    try:
        return _attention_block_impl(x_ncl, weight, bias, single_buffer_params=True)
    except Exception:
        # Safety net: if this JAX build rejects pipeline_mode=pl.Buffered(1),
        # fall back to default (double-buffered) weight/bias blocks.
        return _attention_block_impl(x_ncl, weight, bias, single_buffer_params=False)


def _reference(x_ncl, weight, bias):
    # Pure-JAX reference of the PyTorch module.
    att = jnp.einsum("ncl,oc->nol", x_ncl, weight) + bias[None, :, None]
    att = jax.nn.sigmoid(att)
    return x_ncl * att


if __name__ == "__main__":
    key = jax.random.PRNGKey(0)
    kx, kw, kb = jax.random.split(key, 3)

    N, C, L = 2, 8, 16  # small shapes; C = in_channels
    x = jax.random.normal(kx, (N, C, L), dtype=jnp.float32)
    # Deterministic synthetic Conv1d(C, C, 1) parameters (kernel dim squeezed).
    fan_in = C  # C_in * kernel_size(=1)
    bound = 1.0 / (fan_in ** 0.5)
    weight = jax.random.uniform(kw, (C, C), minval=-bound, maxval=bound,
                                dtype=jnp.float32)
    bias = jax.random.uniform(kb, (C,), minval=-bound, maxval=bound,
                              dtype=jnp.float32)

    out = jax.block_until_ready(attention_block(x, weight, bias))
    ref = jax.block_until_ready(_reference(x, weight, bias))
    assert out.shape == (N, C, L)
    assert jnp.allclose(out, ref, atol=1e-5, rtol=1e-5), "mismatch vs reference"

    # Exercise the no-pad ragged-L path (cdiv grid + dropped OOB stores on the
    # tail block): L is not a multiple of the 128-wide lane tile.
    N2, L2 = 1, 200
    x2 = jax.random.normal(kx, (N2, C, L2), dtype=jnp.float32)
    out2 = jax.block_until_ready(attention_block(x2, weight, bias))
    ref2 = jax.block_until_ready(_reference(x2, weight, bias))
    assert out2.shape == (N2, C, L2)
    assert jnp.allclose(out2, ref2, atol=1e-5, rtol=1e-5), "ragged-L mismatch"

    print("KERNEL_OK")
</pallas_src>

<mosaic_0001>
module attributes {stable_mosaic.version = 11 : i64} {
  func.func @_attention_block_kernel(%arg0: i32, %arg1: i32, %arg2: i32, %arg3: memref<1x8x16xf32, #tpu.memory_space<vmem>>, %arg4: memref<8x8xf32, #tpu.memory_space<vmem>>, %arg5: memref<8x1xf32, #tpu.memory_space<vmem>>, %arg6: memref<1x8x16xf32, #tpu.memory_space<vmem>>) attributes {dimension_semantics = [#tpu.dimension_semantics<parallel>, #tpu.dimension_semantics<parallel>, #tpu.dimension_semantics<arbitrary>], iteration_bounds = array<i64: 2, 1, 1>, scalar_prefetch = 0 : i64, scratch_operands = 0 : i64, tpu.core_type = #tpu.core_type<tc>, window_params = [{transform_indices = @transform_0, window_bounds = array<i64: 1, 8, 16>}, {pipeline_mode = #tpu.pipeline_mode<synchronous>, transform_indices = @transform_1, window_bounds = array<i64: 8, 8>}, {pipeline_mode = #tpu.pipeline_mode<synchronous>, transform_indices = @transform_2, window_bounds = array<i64: 8, 1>}, {transform_indices = @transform_3, window_bounds = array<i64: 1, 8, 16>}]} {
    %c0 = arith.constant 0 : index
    %c0_0 = arith.constant 0 : index
    %c0_1 = arith.constant 0 : index
    %0 = vector.load %arg3[%c0, %c0_0, %c0_1] : memref<1x8x16xf32, #tpu.memory_space<vmem>>, vector<1x8x16xf32>
    %1 = vector.shape_cast %0 : vector<1x8x16xf32> to vector<8x16xf32>
    %c0_2 = arith.constant 0 : index
    %c0_3 = arith.constant 0 : index
    %2 = vector.load %arg4[%c0_2, %c0_3] : memref<8x8xf32, #tpu.memory_space<vmem>>, vector<8x8xf32>
    %cst = arith.constant dense<0.000000e+00> : vector<8x16xf32>
    %3 = tpu.matmul %2, %1, %cst {dimension_numbers = #tpu.dot_dimension_numbers<[1], [0], [0], [1], [0, 0, 1, 1], [], []>} : vector<8x8xf32>, vector<8x16xf32>, vector<8x16xf32> -> vector<8x16xf32>
    %c0_4 = arith.constant 0 : index
    %c0_5 = arith.constant 0 : index
    %4 = vector.load %arg5[%c0_4, %c0_5] : memref<8x1xf32, #tpu.memory_space<vmem>>, vector<8x1xf32>
    %5 = vector.broadcast %4 : vector<8x1xf32> to vector<8x16xf32>
    %6 = arith.addf %3, %5 : vector<8x16xf32>
    %7 = arith.negf %6 : vector<8x16xf32>
    %8 = math.exp %7 : vector<8x16xf32>
    %cst_6 = arith.constant 1.000000e+00 : f32
    %9 = vector.broadcast %cst_6 : f32 to vector<8x16xf32>
    %10 = arith.addf %9, %8 : vector<8x16xf32>
    %11 = arith.divf %9, %10 : vector<8x16xf32>
    %12 = arith.mulf %1, %11 : vector<8x16xf32>
    %c0_7 = arith.constant 0 : index
    %c0_8 = arith.constant 0 : index
    %c0_9 = arith.constant 0 : index
    %13 = vector.load %arg6[%c0_7, %c0_8, %c0_9] : memref<1x8x16xf32, #tpu.memory_space<vmem>>, vector<1x8x16xf32>
    %14 = vector.shape_cast %13 : vector<1x8x16xf32> to vector<8x16xf32>
    %15 = vector.shape_cast %12 : vector<8x16xf32> to vector<1x8x16xf32>
    tpu.vector_store %arg6[%c0_7, %c0_8, %c0_9], %15 {strides = array<i32>} : memref<1x8x16xf32, #tpu.memory_space<vmem>>, vector<1x8x16xf32>,
    return
  }
  func.func @transform_0(%arg0: i32, %arg1: i32, %arg2: i32) -> (i32, i32, i32) {
    %c0_i32 = arith.constant 0 : i32
    %c0_i32_0 = arith.constant 0 : i32
    return %arg0, %c0_i32, %arg1 : i32, i32, i32
  }
  func.func @transform_1(%arg0: i32, %arg1: i32, %arg2: i32) -> (i32, i32) {
    %c0_i32 = arith.constant 0 : i32
    %c0_i32_0 = arith.constant 0 : i32
    return %arg2, %c0_i32 : i32, i32
  }
  func.func @transform_2(%arg0: i32, %arg1: i32, %arg2: i32) -> (i32, i32) {
    %c0_i32 = arith.constant 0 : i32
    %c0_i32_0 = arith.constant 0 : i32
    return %arg2, %c0_i32 : i32, i32
  }
  func.func @transform_3(%arg0: i32, %arg1: i32, %arg2: i32) -> (i32, i32, i32) {
    %c0_i32 = arith.constant 0 : i32
    return %arg0, %arg2, %arg1 : i32, i32, i32
  }
}

module attributes {stable_mosaic.version = 11 : i64} {
  func.func @_attention_block_kernel(%arg0: i32, %arg1: i32, %arg2: i32, %arg3: memref<1x8x16xf32, #tpu.memory_space<vmem>>, %arg4: memref<8x8xf32, #tpu.memory_space<vmem>>, %arg5: memref<8x1xf32, #tpu.memory_space<vmem>>, %arg6: memref<1x8x16xf32, #tpu.memory_space<vmem>>) attributes {dimension_semantics = [#tpu.dimension_semantics<parallel>, #tpu.dimension_semantics<parallel>, #tpu.dimension_semantics<arbitrary>], iteration_bounds = array<i64: 2, 1, 1>, scalar_prefetch = 0 : i64, scratch_operands = 0 : i64, tpu.core_type = #tpu.core_type<tc>, window_params = [{transform_indices = @transform_0, window_bounds = array<i64: 1, 8, 16>}, {transform_indices = @transform_1, window_bounds = array<i64: 8, 8>}, {transform_indices = @transform_2, window_bounds = array<i64: 8, 1>}, {transform_indices = @transform_3, window_bounds = array<i64: 1, 8, 16>}]} {
    %c0 = arith.constant 0 : index
    %c0_0 = arith.constant 0 : index
    %c0_1 = arith.constant 0 : index
    %0 = vector.load %arg3[%c0, %c0_0, %c0_1] : memref<1x8x16xf32, #tpu.memory_space<vmem>>, vector<1x8x16xf32>
    %1 = vector.shape_cast %0 : vector<1x8x16xf32> to vector<8x16xf32>
    %c0_2 = arith.constant 0 : index
    %c0_3 = arith.constant 0 : index
    %2 = vector.load %arg4[%c0_2, %c0_3] : memref<8x8xf32, #tpu.memory_space<vmem>>, vector<8x8xf32>
    %cst = arith.constant dense<0.000000e+00> : vector<8x16xf32>
    %3 = tpu.matmul %2, %1, %cst {dimension_numbers = #tpu.dot_dimension_numbers<[1], [0], [0], [1], [0, 0, 1, 1], [], []>} : vector<8x8xf32>, vector<8x16xf32>, vector<8x16xf32> -> vector<8x16xf32>
    %c0_4 = arith.constant 0 : index
    %c0_5 = arith.constant 0 : index
    %4 = vector.load %arg5[%c0_4, %c0_5] : memref<8x1xf32, #tpu.memory_space<vmem>>, vector<8x1xf32>
    %5 = vector.broadcast %4 : vector<8x1xf32> to vector<8x16xf32>
    %6 = arith.addf %3, %5 : vector<8x16xf32>
    %7 = arith.negf %6 : vector<8x16xf32>
    %8 = math.exp %7 : vector<8x16xf32>
    %cst_6 = arith.constant 1.000000e+00 : f32
    %9 = vector.broadcast %cst_6 : f32 to vector<8x16xf32>
    %10 = arith.addf %9, %8 : vector<8x16xf32>
    %11 = arith.divf %9, %10 : vector<8x16xf32>
    %12 = arith.mulf %1, %11 : vector<8x16xf32>
    %c0_7 = arith.constant 0 : index
    %c0_8 = arith.constant 0 : index
    %c0_9 = arith.constant 0 : index
    %13 = vector.load %arg6[%c0_7, %c0_8, %c0_9] : memref<1x8x16xf32, #tpu.memory_space<vmem>>, vector<1x8x16xf32>
    %14 = vector.shape_cast %13 : vector<1x8x16xf32> to vector<8x16xf32>
    %15 = vector.shape_cast %12 : vector<8x16xf32> to vector<1x8x16xf32>
    tpu.vector_store %arg6[%c0_7, %c0_8, %c0_9], %15 {strides = array<i32>} : memref<1x8x16xf32, #tpu.memory_space<vmem>>, vector<1x8x16xf32>,
    return
  }
  func.func @transform_0(%arg0: i32, %arg1: i32, %arg2: i32) -> (i32, i32, i32) {
    %c0_i32 = arith.constant 0 : i32
    %c0_i32_0 = arith.constant 0 : i32
    return %arg0, %c0_i32, %arg1 : i32, i32, i32
  }
  func.func @transform_1(%arg0: i32, %arg1: i32, %arg2: i32) -> (i32, i32) {
    %c0_i32 = arith.constant 0 : i32
    %c0_i32_0 = arith.constant 0 : i32
    return %arg2, %c0_i32 : i32, i32
  }
  func.func @transform_2(%arg0: i32, %arg1: i32, %arg2: i32) -> (i32, i32) {
    %c0_i32 = arith.constant 0 : i32
    %c0_i32_0 = arith.constant 0 : i32
    return %arg2, %c0_i32 : i32, i32
  }
  func.func @transform_3(%arg0: i32, %arg1: i32, %arg2: i32) -> (i32, i32, i32) {
    %c0_i32 = arith.constant 0 : i32
    return %arg0, %arg2, %arg1 : i32, i32, i32
  }
}

</mosaic_0001>

<bundles_post_ra>
// kernel: _attention_block_impl.1
= control target key start
LH: loop header
LB: loop body
LE: loop exit
PB: predicated region body
PF: predicated region fallthrough
CT: control target
= control target key end

     0   :  { %8 = vsyncpa [#allocation3], 0  ;;  %s836_s0 = inlined_call_operand.hbm [shape: f32[2,8,16], index: 0, kind: input, shape index: {}]   ;;  %s837_s1 = inlined_call_operand.vmem [shape: f32[8,8], index: 1, kind: input, shape index: {}]   ;;  %s838_s2 = inlined_call_operand.vmem [shape: f32[8,1], index: 2, kind: input, shape index: {}]   ;;  %s839_s3 = inlined_call_operand.hbm [shape: f32[2,8,16], index: 3, kind: output, shape index: {}]  }
   0x1   :  { %10 = vsyncpa [#allocation3 + $0x1], 0 }
   0x2   :  { %11 = vsyncpa [#allocation4], 0 }
   0x3   :  { %13 = vsyncpa [#allocation4 + $0x1], 0  ;;  %s696_s12 = smov 0   ;;  %s698_s13 = smov 0  }
   0x4   :  { %s700_s14 = smov 0   ;;  %s702_s15 = smov 0  }
   0x5   :  { %s704_s16 = smov 0   ;;  %s706_s17 = smov 0  }
   0x6 LB: > { %s467_s18 = sadd.s32 4294967295, %s669_s17   ;;  %s468_s19 = sadd.s32 4294967294, %s669_s17   ;;  %s669_s17 = sphi %s706_s17, %s19_s17   ;;  %s665_s16 = sphi %s704_s16, %s851_s16   ;;  %s661_s15 = sphi %s702_s15, %s850_s15   ;;  %s657_s14 = sphi %s700_s14, %s849_s14   ;;  %s653_s13 = sphi %s698_s13, %s848_s13   ;;  %s649_s12 = sphi %s696_s12, %s847_s12  }
   0x7   : > { %s38_s20 = sadd.s32 1, %s665_s16  ;;  %s47_s21 = sadd.s32 1, %s657_s14 }
   0x8   : > { %p40_p0 = scmp.ge.s32.totalorder %s38_s20, 2  ;;  %p54_p1 = scmp.ne.s32.totalorder %s657_s14, %s653_s13 }
   0x9   : > { %p55_p2 = scmp.eq.s32.totalorder %s669_s17, 0  ;;  %p60_p3 = scmp.ne.s32.totalorder %s653_s13, %s649_s12 }
   0xa   : > { %s853_s20 = smov (%p40_p0, %s38_s20), 0  ;;  %p61_p5 = scmp.eq.s32.totalorder %s467_s18, 0 }
   0xb   : > { %p737_p4 = por %p55_p2, %p54_p1  ;;  %s42_s23 = ssub.s32 %s665_s16, %s853_s20 }
   0xc   : > { %p140_p6 = scmp.eq.s32.totalorder %s467_s18, 1  ;;  %p45_p7 = scmp.eq.s32.totalorder %s42_s23, 0 }
   0xd   : > { %p743_p8 = por %p61_p5, %p60_p3  ;;  %p146_p10 = scmp.eq.s32.totalorder %s468_s19, 1 }
   0xe   : > { %p747_p9 = por %p140_p6, %p54_p1  ;;  %p503_p13 = scmp.lt.s32.totalorder %s669_s17, 2 }
   0xf   : > { %s752_s26 = scalar_select %p45_p7, %s657_s14, %s47_s21  }
  0x10   : > { %p754_p11 = por %p146_p10, %p60_p3  ;;  %s180_s28 = sand.u32 1, %s657_s14  }
  0x11   : > { %s473_s29 = sshll.u32 %s180_s28, 3  ;;  %s474_s30 = sshll.u32 %s665_s16, 7 }
  0x12   : > { %s843_s27 = scalar_select %p754_p11, 1, 0 }
  0x13   : > { %s190_s6 = scalar_lea.hbm %s836_s0, %s474_s30  ;;  %s184_s7 = scalar_lea.vmem [#allocation2], %s473_s29 }
  0x14   : > { %s192_s8 = sshll.u32 %s184_s7, 4  ;;  %p767_p0 = pnand %p503_p13, %p737_p4  ;;  %s193_s8 = int_to_ptr.vmem [resolvable:$true] %s192_s8 }
  0x15   : > { %p475_p1 = scmp.ge.s32.totalorder %s669_s17, 1  ;;  %p197_p2 = scmp.lt.s32.totalorder %s669_s17, 3 }
  0x16   : > { %s181_s10 = scalar_lea.sflag [#allocation3], %s180_s28  ;;  %p563_p3 = pneg %p767_p0 }
  0x17   : > { %s574_s11 = scalar_lea.vmem %s193_s8, 128  ;;  %s671_s18 = smov [#allocation2]  }
  0x18   : > { %p575_p5 = scmp.ne.s32.totalorder %s193_s8, %s574_s11  ;;  %s579_s19 = sshll.u32 %s671_s18, 4  ;;  %s580_s19 = int_to_ptr.vmem [resolvable:$false] %s579_s19 }
  0x19   : > { %s581_s21 = scalar_lea.vmem %s580_s19, 256  ;;  %p582_p10 = scmp.lt.s32.totalorder %s193_s8, %s580_s19 }
  0x1a   : > { %p577_p6 = pnand %p575_p5, %p563_p3  ;;  %p583_p12 = scmp.lt.s32.totalorder %s581_s21, %s574_s11 }
  0x1c   : > { %p578_p7 = pneg %p577_p6  ;;  %p584_p4 = por %p583_p12, %p582_p10 }
  0x1e   : > { %p585_p13 = pnand %p584_p4, %p578_p7 }
  0x20   : > { %588 = shalt.err (!%p585_p13)
}
  0x21   : > { %498 = dma.hbm_to_vmem [thread:$0]  (!%p767_p0), %s190_s6, 128, %s193_s8, %s181_s10  }
  0x22   : > { %p198_p11 = pnand %p475_p1, %p197_p2 }
  0x23   : > { %s782_s22 = sand.u32 (!%p198_p11), 1, %s653_s13  }
  0x24   : > { %201 = sbr.rel (%p198_p11) target bundleno = 287 (0x11f), region = 32  ;;  %s476_s23 = sshll.u32 (!%p198_p11), %s782_s22, 3 }
  0x25   : > { %s204_s28 = scalar_lea.sflag (!%p198_p11), [#allocation3], %s782_s22  ;;  %s207_s29 = scalar_lea.vmem (!%p198_p11), [#allocation2], %s476_s23 }
  0x29   : > { %640 = dma.done.wait (%p743_p8), %s204_s28, 128  }
  0x2a   : > { %642 = vsyncadd (%p743_p8), %s204_s28, 4294967168  ;;  %v672_v0 = vmov 0.0   ;;  %vm673_vm0 = vmmov 0   ;;  %v674_v1 = vmov 0   ;;  %vm254_vm1 = vcmask 64512   ;;  %v246_v2 = vld [vmem:[%s207_s29] sm:$0xff] }
  0x2b   : > { %486 = vmatprep.subr.mxu0 %v672_v0  ;;  %488 = vmatprep.mubr.msk.f32.mxu0 %vm673_vm0, %v672_v0  ;;  %v247_v3 = vld [vmem:[%s837_s1] sm:$0xff]  ;;  %s481_s24 = sshll.u32 %s661_s15, 7  ;;  %s237_s7 = scalar_lea.vmem [#allocation5], %s476_s23  ;;  %vm335_vm2 = vcmask 130048  }
  0x2c   : > { %556 = vset.pattern.permute.xlu0 %v674_v1  ;;  %v248_v4 = vld [vmem:[%s838_s2] sm:$0xff]  ;;  %487 = vmatpush3.msra.mxu0 %v246_v2  ;;  %s353_s8 = sshll.u32 %s237_s7, 4  ;;  %s351_s11 = scalar_lea.hbm %s839_s3, %s481_s24  ;;  %s354_s8 = int_to_ptr.vmem [resolvable:$true] %s353_s8 }
  0x2d   : > { %251 = vperm.xlu0 %556, %v248_v4   ;;  %489 = vmatmul.mubr.msk.f32.vlgmr.msra.gmra.mxu0 %vm254_vm1, %v247_v3  ;;  %s338_s18 = scalar_lea.sflag [#allocation4], %s782_s22  ;;  %s589_s19 = scalar_lea.vmem %s354_s8, 128 }
  0x2e   : > { %p590_p8 = scmp.ne.s32.totalorder %s354_s8, %s589_s19  ;;  %s675_s21 = smov [#allocation5]  }
  0x2f   : > { %s593_s28 = sshll.u32 %s675_s21, 4  ;;  %s594_s28 = int_to_ptr.vmem [resolvable:$false] %s593_s28 }
  0x30   : > { %p591_p11 = pnand %p590_p8, %p747_p9  ;;  %s595_s15 = scalar_lea.vmem %s594_s28, 256 }
  0x31   : > { %p596_p0 = scmp.lt.s32.totalorder %s354_s8, %s594_s28  ;;  %p597_p1 = scmp.lt.s32.totalorder %s595_s15, %s589_s19 }
  0x32   : > { %p592_p12 = pneg %p591_p11 }
  0x33   : > { %p598_p2 = por %p597_p1, %p596_p0 }
  0x35   : > { %p599_p3 = pnand %p598_p2, %p592_p12 }
  0xa8   : > { %v252_v5 = vpop.permute.xlu0 %251 }
  0xed   : > { %v324_v6 = vpop.f32.mrf.mxu0 }
  0xee   : > { %v325_v7 = vadd.f32 %v324_v6, %v252_v5 }
  0xef   : > { %v490_v8 = vpop.f32.mrf.mxu0 }
  0xf0   : > { %v479_v9 = vmul.f32 -1.442695, %v325_v7 }
  0xf2   : > { %557 = vpow2.f32 %v479_v9 }
  0xff   : > { %v558_v10 = vpop.eup %557 }
 0x100   : > { %v331_v11 = vadd.f32 1.0, %v558_v10 }
 0x102   : > { %559 = vrcp.f32 %v331_v11 }
 0x10f   : > { %v560_v12 = vpop.eup %559 }
 0x110   : > { %v334_v13 = vmul.f32 %v560_v12, %v246_v2 }
 0x112   : > { %336 = vst.msk [vmem:[%s237_s7] sm:$0xff] %vm335_vm2, %v334_v13 }
 0x113   : > { %602 = shalt.err (!%p599_p3)
}
 0x114   : > { %s603_s23 = scalar_lea.hbm %s351_s11, 128  ;;  %s607_s30 = scalar_lea.hbm %s839_s3, 256 }
 0x115   : > { %p604_p5 = scmp.ne.s32.totalorder %s351_s11, %s603_s23  ;;  %p608_p10 = scmp.lt.s32.totalorder %s351_s11, %s839_s3 }
 0x116   : > { %p609_p4 = scmp.lt.s32.totalorder %s607_s30, %s603_s23 }
 0x117   : > { %p605_p6 = pnand %p604_p5, %p747_p9 }
 0x118   : > { %p610_p13 = por %p609_p4, %p608_p10 }
 0x119   : > { %p606_p7 = pneg %p605_p6 }
 0x11b   : > { %p611_p8 = pnand %p610_p13, %p606_p7 }
 0x11d   : > { %614 = shalt.err (!%p611_p8)
}
 0x11e   : > { %493 = dma.vmem_to_hbm [thread:$0]  (%p747_p9), %s354_s8, 128, %s351_s11, %s338_s18  }
 0x11f PF: > { %s365_s6 = sand.u32 1, %s649_s12   ;;  %p845_p11 = scmp.ne.s32.totalorder %s843_s27, 0 }
 0x120   : > { %p846_p12 = scmp.ge.s32.totalorder %s669_s17, 2  ;;  %s366_s24 = scalar_lea.sflag [#allocation4], %s365_s6 }
 0x122   : > { %p500_p0 = pnand %p846_p12, %p845_p11 }
 0x124   : > { %p501_p1 = pneg %p500_p0 }
 0x126   : > { %644 = dma.done.wait (%p501_p1), %s366_s24, 128  }
 0x127   : > { %646 = vsyncadd (%p501_p1), %s366_s24, 4294967168  ;;  %s19_s17 = sadd.s32 1, %s669_s17   ;;  %s847_s12 = smov %s653_s13 }
 0x128   : > { %p16_p2 = scmp.ge.s32.totalorder %s19_s17, 4   ;;  %s848_s13 = smov %s657_s14 }
 0x129   : > { %s849_s14 = smov %s752_s26  ;;  %s850_s15 = smov %s665_s16 }
 0x12a   : > { %s851_s16 = smov %s853_s20  ;;  %18 = sbr.rel (!%p16_p2) target bundleno = 6 (0x6), region = 83 }
 0x12f   :  { %371 = vsyncpa [#allocation3], 1 }
 0x130   :  { %373 = vsyncpa [#allocation3 + $0x1], 1 }
 0x131   :  { %374 = vsyncpa [#allocation4], 1 }
 0x132   :  { %376 = vsyncpa [#allocation4 + $0x1], 1 }

// kernel: _attention_block_impl.1
= control target key start
LH: loop header
LB: loop body
LE: loop exit
PB: predicated region body
PF: predicated region fallthrough
CT: control target
= control target key end

     0   :  { %8 = vsyncpa [#allocation3], 0  ;;  %s836_s0 = inlined_call_operand.hbm [shape: f32[2,8,16], index: 0, kind: input, shape index: {}]   ;;  %s837_s1 = inlined_call_operand.vmem [shape: f32[8,8], index: 1, kind: input, shape index: {}]   ;;  %s838_s2 = inlined_call_operand.vmem [shape: f32[8,1], index: 2, kind: input, shape index: {}]   ;;  %s839_s3 = inlined_call_operand.hbm [shape: f32[2,8,16], index: 3, kind: output, shape index: {}]  }
   0x1   :  { %10 = vsyncpa [#allocation3 + $0x1], 0 }
   0x2   :  { %11 = vsyncpa [#allocation4], 0 }
   0x3   :  { %13 = vsyncpa [#allocation4 + $0x1], 0  ;;  %s696_s12 = smov 0   ;;  %s698_s13 = smov 0  }
   0x4   :  { %s700_s14 = smov 0   ;;  %s702_s15 = smov 0  }
   0x5   :  { %s704_s16 = smov 0   ;;  %s706_s17 = smov 0  }
   0x6 LB: > { %s467_s18 = sadd.s32 4294967295, %s669_s17   ;;  %s468_s19 = sadd.s32 4294967294, %s669_s17   ;;  %s669_s17 = sphi %s706_s17, %s19_s17   ;;  %s665_s16 = sphi %s704_s16, %s851_s16   ;;  %s661_s15 = sphi %s702_s15, %s850_s15   ;;  %s657_s14 = sphi %s700_s14, %s849_s14   ;;  %s653_s13 = sphi %s698_s13, %s848_s13   ;;  %s649_s12 = sphi %s696_s12, %s847_s12  }
   0x7   : > { %s38_s20 = sadd.s32 1, %s665_s16  ;;  %s47_s21 = sadd.s32 1, %s657_s14 }
   0x8   : > { %p40_p0 = scmp.ge.s32.totalorder %s38_s20, 2  ;;  %p54_p1 = scmp.ne.s32.totalorder %s657_s14, %s653_s13 }
   0x9   : > { %p55_p2 = scmp.eq.s32.totalorder %s669_s17, 0  ;;  %p60_p3 = scmp.ne.s32.totalorder %s653_s13, %s649_s12 }
   0xa   : > { %s853_s20 = smov (%p40_p0, %s38_s20), 0  ;;  %p61_p5 = scmp.eq.s32.totalorder %s467_s18, 0 }
   0xb   : > { %p737_p4 = por %p55_p2, %p54_p1  ;;  %s42_s23 = ssub.s32 %s665_s16, %s853_s20 }
   0xc   : > { %p140_p6 = scmp.eq.s32.totalorder %s467_s18, 1  ;;  %p45_p7 = scmp.eq.s32.totalorder %s42_s23, 0 }
   0xd   : > { %p743_p8 = por %p61_p5, %p60_p3  ;;  %p146_p10 = scmp.eq.s32.totalorder %s468_s19, 1 }
   0xe   : > { %p747_p9 = por %p140_p6, %p54_p1  ;;  %p503_p13 = scmp.lt.s32.totalorder %s669_s17, 2 }
   0xf   : > { %s752_s26 = scalar_select %p45_p7, %s657_s14, %s47_s21  }
  0x10   : > { %p754_p11 = por %p146_p10, %p60_p3  ;;  %s180_s28 = sand.u32 1, %s657_s14  }
  0x11   : > { %s473_s29 = sshll.u32 %s180_s28, 3  ;;  %s474_s30 = sshll.u32 %s665_s16, 7 }
  0x12   : > { %s843_s27 = scalar_select %p754_p11, 1, 0 }
  0x13   : > { %s190_s6 = scalar_lea.hbm %s836_s0, %s474_s30  ;;  %s184_s7 = scalar_lea.vmem [#allocation2], %s473_s29 }
  0x14   : > { %s192_s8 = sshll.u32 %s184_s7, 4  ;;  %p767_p0 = pnand %p503_p13, %p737_p4  ;;  %s193_s8 = int_to_ptr.vmem [resolvable:$true] %s192_s8 }
  0x15   : > { %p475_p1 = scmp.ge.s32.totalorder %s669_s17, 1  ;;  %p197_p2 = scmp.lt.s32.totalorder %s669_s17, 3 }
  0x16   : > { %s181_s10 = scalar_lea.sflag [#allocation3], %s180_s28  ;;  %p563_p3 = pneg %p767_p0 }
  0x17   : > { %s574_s11 = scalar_lea.vmem %s193_s8, 128  ;;  %s671_s18 = smov [#allocation2]  }
  0x18   : > { %p575_p5 = scmp.ne.s32.totalorder %s193_s8, %s574_s11  ;;  %s579_s19 = sshll.u32 %s671_s18, 4  ;;  %s580_s19 = int_to_ptr.vmem [resolvable:$false] %s579_s19 }
  0x19   : > { %s581_s21 = scalar_lea.vmem %s580_s19, 256  ;;  %p582_p10 = scmp.lt.s32.totalorder %s193_s8, %s580_s19 }
  0x1a   : > { %p577_p6 = pnand %p575_p5, %p563_p3  ;;  %p583_p12 = scmp.lt.s32.totalorder %s581_s21, %s574_s11 }
  0x1c   : > { %p578_p7 = pneg %p577_p6  ;;  %p584_p4 = por %p583_p12, %p582_p10 }
  0x1e   : > { %p585_p13 = pnand %p584_p4, %p578_p7 }
  0x20   : > { %588 = shalt.err (!%p585_p13)
}
  0x21   : > { %498 = dma.hbm_to_vmem [thread:$0]  (!%p767_p0), %s190_s6, 128, %s193_s8, %s181_s10  }
  0x22   : > { %p198_p11 = pnand %p475_p1, %p197_p2 }
  0x23   : > { %s782_s22 = sand.u32 (!%p198_p11), 1, %s653_s13  }
  0x24   : > { %201 = sbr.rel (%p198_p11) target bundleno = 287 (0x11f), region = 32  ;;  %s476_s23 = sshll.u32 (!%p198_p11), %s782_s22, 3 }
  0x25   : > { %s204_s28 = scalar_lea.sflag (!%p198_p11), [#allocation3], %s782_s22  ;;  %s207_s29 = scalar_lea.vmem (!%p198_p11), [#allocation2], %s476_s23 }
  0x29   : > { %640 = dma.done.wait (%p743_p8), %s204_s28, 128  }
  0x2a   : > { %642 = vsyncadd (%p743_p8), %s204_s28, 4294967168  ;;  %v672_v0 = vmov 0.0   ;;  %vm673_vm0 = vmmov 0   ;;  %v674_v1 = vmov 0   ;;  %vm254_vm1 = vcmask 64512   ;;  %v246_v2 = vld [vmem:[%s207_s29] sm:$0xff] }
  0x2b   : > { %486 = vmatprep.subr.mxu0 %v672_v0  ;;  %488 = vmatprep.mubr.msk.f32.mxu0 %vm673_vm0, %v672_v0  ;;  %v247_v3 = vld [vmem:[%s837_s1] sm:$0xff]  ;;  %s481_s24 = sshll.u32 %s661_s15, 7  ;;  %s237_s7 = scalar_lea.vmem [#allocation5], %s476_s23  ;;  %vm335_vm2 = vcmask 130048  }
  0x2c   : > { %556 = vset.pattern.permute.xlu0 %v674_v1  ;;  %v248_v4 = vld [vmem:[%s838_s2] sm:$0xff]  ;;  %487 = vmatpush3.msra.mxu0 %v246_v2  ;;  %s353_s8 = sshll.u32 %s237_s7, 4  ;;  %s351_s11 = scalar_lea.hbm %s839_s3, %s481_s24  ;;  %s354_s8 = int_to_ptr.vmem [resolvable:$true] %s353_s8 }
  0x2d   : > { %251 = vperm.xlu0 %556, %v248_v4   ;;  %489 = vmatmul.mubr.msk.f32.vlgmr.msra.gmra.mxu0 %vm254_vm1, %v247_v3  ;;  %s338_s18 = scalar_lea.sflag [#allocation4], %s782_s22  ;;  %s589_s19 = scalar_lea.vmem %s354_s8, 128 }
  0x2e   : > { %p590_p8 = scmp.ne.s32.totalorder %s354_s8, %s589_s19  ;;  %s675_s21 = smov [#allocation5]  }
  0x2f   : > { %s593_s28 = sshll.u32 %s675_s21, 4  ;;  %s594_s28 = int_to_ptr.vmem [resolvable:$false] %s593_s28 }
  0x30   : > { %p591_p11 = pnand %p590_p8, %p747_p9  ;;  %s595_s15 = scalar_lea.vmem %s594_s28, 256 }
  0x31   : > { %p596_p0 = scmp.lt.s32.totalorder %s354_s8, %s594_s28  ;;  %p597_p1 = scmp.lt.s32.totalorder %s595_s15, %s589_s19 }
  0x32   : > { %p592_p12 = pneg %p591_p11 }
  0x33   : > { %p598_p2 = por %p597_p1, %p596_p0 }
  0x35   : > { %p599_p3 = pnand %p598_p2, %p592_p12 }
  0xa8   : > { %v252_v5 = vpop.permute.xlu0 %251 }
  0xed   : > { %v324_v6 = vpop.f32.mrf.mxu0 }
  0xee   : > { %v325_v7 = vadd.f32 %v324_v6, %v252_v5 }
  0xef   : > { %v490_v8 = vpop.f32.mrf.mxu0 }
  0xf0   : > { %v479_v9 = vmul.f32 -1.442695, %v325_v7 }
  0xf2   : > { %557 = vpow2.f32 %v479_v9 }
  0xff   : > { %v558_v10 = vpop.eup %557 }
 0x100   : > { %v331_v11 = vadd.f32 1.0, %v558_v10 }
 0x102   : > { %559 = vrcp.f32 %v331_v11 }
 0x10f   : > { %v560_v12 = vpop.eup %559 }
 0x110   : > { %v334_v13 = vmul.f32 %v560_v12, %v246_v2 }
 0x112   : > { %336 = vst.msk [vmem:[%s237_s7] sm:$0xff] %vm335_vm2, %v334_v13 }
 0x113   : > { %602 = shalt.err (!%p599_p3)
}
 0x114   : > { %s603_s23 = scalar_lea.hbm %s351_s11, 128  ;;  %s607_s30 = scalar_lea.hbm %s839_s3, 256 }
 0x115   : > { %p604_p5 = scmp.ne.s32.totalorder %s351_s11, %s603_s23  ;;  %p608_p10 = scmp.lt.s32.totalorder %s351_s11, %s839_s3 }
 0x116   : > { %p609_p4 = scmp.lt.s32.totalorder %s607_s30, %s603_s23 }
 0x117   : > { %p605_p6 = pnand %p604_p5, %p747_p9 }
 0x118   : > { %p610_p13 = por %p609_p4, %p608_p10 }
 0x119   : > { %p606_p7 = pneg %p605_p6 }
 0x11b   : > { %p611_p8 = pnand %p610_p13, %p606_p7 }
 0x11d   : > { %614 = shalt.err (!%p611_p8)
}
 0x11e   : > { %493 = dma.vmem_to_hbm [thread:$0]  (%p747_p9), %s354_s8, 128, %s351_s11, %s338_s18  }
 0x11f PF: > { %s365_s6 = sand.u32 1, %s649_s12   ;;  %p845_p11 = scmp.ne.s32.totalorder %s843_s27, 0 }
 0x120   : > { %p846_p12 = scmp.ge.s32.totalorder %s669_s17, 2  ;;  %s366_s24 = scalar_lea.sflag [#allocation4], %s365_s6 }
 0x122   : > { %p500_p0 = pnand %p846_p12, %p845_p11 }
 0x124   : > { %p501_p1 = pneg %p500_p0 }
 0x126   : > { %644 = dma.done.wait (%p501_p1), %s366_s24, 128  }
 0x127   : > { %646 = vsyncadd (%p501_p1), %s366_s24, 4294967168  ;;  %s19_s17 = sadd.s32 1, %s669_s17   ;;  %s847_s12 = smov %s653_s13 }
 0x128   : > { %p16_p2 = scmp.ge.s32.totalorder %s19_s17, 4   ;;  %s848_s13 = smov %s657_s14 }
 0x129   : > { %s849_s14 = smov %s752_s26  ;;  %s850_s15 = smov %s665_s16 }
 0x12a   : > { %s851_s16 = smov %s853_s20  ;;  %18 = sbr.rel (!%p16_p2) target bundleno = 6 (0x6), region = 83 }
 0x12f   :  { %371 = vsyncpa [#allocation3], 1 }
 0x130   :  { %373 = vsyncpa [#allocation3 + $0x1], 1 }
 0x131   :  { %374 = vsyncpa [#allocation4], 1 }
 0x132   :  { %376 = vsyncpa [#allocation4 + $0x1], 1 }

</bundles_post_ra>
